<compile_context>
chip_gen: v7x
topology: tpu7x:2x2x1
jax: 0.10.0
libtpu: 0.0.40
codegen_flags: <defaults>
</compile_context>

<pallas_src>
import jax
import jax.numpy as jnp
from jax.experimental import pallas as pl
from jax.experimental.pallas import tpu as pltpu


def _gcn_layers_kernel(a_ref, x_ref, w_ref, b_ref, stack_ref, h_scr):
    """One grid step == one SingleGCN layer. h_scr carries hidden across steps."""
    @pl.when(pl.program_id(0) == 0)
    def _():
        h_scr[...] = x_ref[...]

    h = h_scr[...]
    # Aggregation: (A/deg^T + I) @ h   (A_hat prefused in the wrapper)
    agg = jnp.dot(a_ref[...], h, preferred_element_type=jnp.float32)
    # Shared Linear(size, size): agg @ W + b   (W stored (in, out) = torch W.T)
    z = jnp.dot(agg, w_ref[...], preferred_element_type=jnp.float32) + b_ref[...]
    # LeakyReLU (torch default negative_slope = 0.01)
    h_new = jnp.where(z > 0, z, jnp.float32(0.01) * z)

    h_scr[...] = h_new                      # carry to next layer (stays in VMEM)
    stack_ref[...] = h_new.astype(stack_ref.dtype)   # this layer's stack slab


def gcn_process_forward(adj, degree, hidden0, stack0, weight_t, bias, *, num_layers):
    """adj:(N,N) with adj[dst,src]=1; degree:(N,) node 'degree' data;
    hidden0:(N,D); stack0:(N,S0); weight_t:(D,D) (= torch weight.T); bias:(1,D).
    Returns (final_hidden (N,D), final_stack (N, S0 + num_layers*D))."""
    N, D = hidden0.shape

    # Pre-fused normalized adjacency with self term (constant across layers).
    a_hat = adj * (1.0 / degree)[None, :] + jnp.eye(N, dtype=adj.dtype)

    stack_layers = pl.pallas_call(
        _gcn_layers_kernel,
        out_shape=jax.ShapeDtypeStruct((N, num_layers * D), jnp.float32),
        grid_spec=pltpu.PrefetchScalarGridSpec(
            num_scalar_prefetch=0,
            grid=(num_layers,),
            in_specs=[
                pl.BlockSpec((N, N), lambda l: (0, 0)),   # A_hat, VMEM-resident
                pl.BlockSpec((N, D), lambda l: (0, 0)),   # initial hidden
                pl.BlockSpec((D, D), lambda l: (0, 0)),   # shared weight
                pl.BlockSpec((1, D), lambda l: (0, 0)),   # shared bias
            ],
            out_specs=pl.BlockSpec((N, D), lambda l: (0, l)),  # per-layer slab
            scratch_shapes=[pltpu.VMEM((N, D), jnp.float32)],  # carried hidden
        ),
        compiler_params=pltpu.CompilerParams(
            # layer axis is a sequential recurrence -> arbitrary
            dimension_semantics=("arbitrary",)),
    )(a_hat, hidden0, weight_t, bias)

    hidden_final = stack_layers[:, -D:]                       # last layer's slab
    stack_final = jnp.concatenate([stack0, stack_layers], axis=1)
    return hidden_final, stack_final


def _reference(adj, degree, hidden0, stack0, w, b, num_layers, slope=0.01):
    h = hidden0
    stack = stack0
    for _ in range(num_layers):
        agg = adj @ (h / degree[:, None]) + h
        z = agg @ w + b
        h = jnp.where(z > 0, z, slope * z)
        stack = jnp.concatenate([stack, h], axis=1)
    return h, stack


if __name__ == "__main__":
    size = 128          # GCNProcess(size=...)  (128 -> lane-dense slabs)
    layers = 3          # GCNProcess(layer=...)
    num_nodes = 16      # small graph, sublane-aligned

    key = jax.random.PRNGKey(0)
    k_h, k_w, k_b, k_e = jax.random.split(key, 4)

    # Directed graph: ring (guarantees every node has an in-edge) + random edges.
    src = jnp.arange(num_nodes)
    dst = (src + 1) % num_nodes
    adj = jnp.zeros((num_nodes, num_nodes), jnp.float32).at[dst, src].set(1.0)
    extra = (jax.random.uniform(k_e, (num_nodes, num_nodes)) < 0.15).astype(jnp.float32)
    extra = extra * (1.0 - jnp.eye(num_nodes, dtype=jnp.float32))  # no self loops
    adj = jnp.clip(adj + extra, 0.0, 1.0)

    # Node data 'degree' = out-degree (what edge.src['degree'] reads), >= 1.
    degree = jnp.maximum(jnp.sum(adj, axis=0), 1.0)

    hidden0 = jax.random.normal(k_h, (num_nodes, size), dtype=jnp.float32)
    stack0 = hidden0  # ndata['stack'] initialized with the input features

    # Shared nn.Linear(size, size): weight stored transposed -> y = x @ W + b.
    weight_t = jax.random.normal(k_w, (size, size), dtype=jnp.float32) / jnp.sqrt(
        jnp.float32(size))
    bias = jax.random.normal(k_b, (1, size), dtype=jnp.float32) * 0.1

    hid, stack = gcn_process_forward(
        adj, degree, hidden0, stack0, weight_t, bias, num_layers=layers)
    hid = jax.block_until_ready(hid)
    stack = jax.block_until_ready(stack)

    ref_hid, ref_stack = _reference(adj, degree, hidden0, stack0, weight_t, bias, layers)
    assert hid.shape == (num_nodes, size)
    assert stack.shape == (num_nodes, size * (layers + 1))
    assert jnp.allclose(hid, ref_hid, atol=1e-4, rtol=1e-4), "hidden mismatch"
    assert jnp.allclose(stack, ref_stack, atol=1e-4, rtol=1e-4), "stack mismatch"

    print("KERNEL_OK")
</pallas_src>

<mosaic_0001>
module attributes {stable_mosaic.version = 11 : i64} {
  func.func @_gcn_layers_kernel(%arg0: i32, %arg1: memref<16x16xf32, #tpu.memory_space<vmem>>, %arg2: memref<16x128xf32, #tpu.memory_space<vmem>>, %arg3: memref<128x128xf32, #tpu.memory_space<vmem>>, %arg4: memref<1x128xf32, #tpu.memory_space<vmem>>, %arg5: memref<16x128xf32, #tpu.memory_space<vmem>>, %arg6: memref<16x128xf32, #tpu.memory_space<vmem>>) attributes {dimension_semantics = [#tpu.dimension_semantics<arbitrary>], iteration_bounds = array<i64: 3>, scalar_prefetch = 0 : i64, scratch_operands = 1 : i64, tpu.core_type = #tpu.core_type<tc>, window_params = [{pipeline_mode = #tpu.pipeline_mode<synchronous>, transform_indices = @transform_0, window_bounds = array<i64: 16, 16>}, {pipeline_mode = #tpu.pipeline_mode<synchronous>, transform_indices = @transform_1, window_bounds = array<i64: 16, 128>}, {pipeline_mode = #tpu.pipeline_mode<synchronous>, transform_indices = @transform_2, window_bounds = array<i64: 128, 128>}, {pipeline_mode = #tpu.pipeline_mode<synchronous>, transform_indices = @transform_3, window_bounds = array<i64: 1, 128>}, {transform_indices = @transform_4, window_bounds = array<i64: 16, 128>}]} {
    %c0_i32 = arith.constant 0 : i32
    %0 = arith.cmpi eq, %arg0, %c0_i32 : i32
    %1 = arith.extui %0 : i1 to i32
    %c0_i32_0 = arith.constant 0 : i32
    %2 = arith.cmpi ne, %1, %c0_i32_0 : i32
    scf.if %2 {
      %c0_15 = arith.constant 0 : index
      %c0_16 = arith.constant 0 : index
      %18 = vector.load %arg2[%c0_15, %c0_16] : memref<16x128xf32, #tpu.memory_space<vmem>>, vector<16x128xf32>
      %c0_17 = arith.constant 0 : index
      %c0_18 = arith.constant 0 : index
      %19 = vector.load %arg6[%c0_17, %c0_18] : memref<16x128xf32, #tpu.memory_space<vmem>>, vector<16x128xf32>
      tpu.vector_store %arg6[%c0_17, %c0_18], %18 {strides = array<i32>} : memref<16x128xf32, #tpu.memory_space<vmem>>, vector<16x128xf32>,
    } else {
    }
    %c0 = arith.constant 0 : index
    %c0_1 = arith.constant 0 : index
    %3 = vector.load %arg6[%c0, %c0_1] : memref<16x128xf32, #tpu.memory_space<vmem>>, vector<16x128xf32>
    %c0_2 = arith.constant 0 : index
    %c0_3 = arith.constant 0 : index
    %4 = vector.load %arg1[%c0_2, %c0_3] : memref<16x16xf32, #tpu.memory_space<vmem>>, vector<16x16xf32>
    %cst = arith.constant dense<0.000000e+00> : vector<16x128xf32>
    %5 = tpu.matmul %4, %3, %cst {dimension_numbers = #tpu.dot_dimension_numbers<[1], [0], [0], [1], [0, 0, 1, 1], [], []>} : vector<16x16xf32>, vector<16x128xf32>, vector<16x128xf32> -> vector<16x128xf32>
    %c0_4 = arith.constant 0 : index
    %c0_5 = arith.constant 0 : index
    %6 = vector.load %arg3[%c0_4, %c0_5] : memref<128x128xf32, #tpu.memory_space<vmem>>, vector<128x128xf32>
    %cst_6 = arith.constant dense<0.000000e+00> : vector<16x128xf32>
    %7 = tpu.matmul %5, %6, %cst_6 {dimension_numbers = #tpu.dot_dimension_numbers<[1], [0], [0], [1], [0, 0, 1, 1], [], []>} : vector<16x128xf32>, vector<128x128xf32>, vector<16x128xf32> -> vector<16x128xf32>
    %c0_7 = arith.constant 0 : index
    %c0_8 = arith.constant 0 : index
    %8 = vector.load %arg4[%c0_7, %c0_8] : memref<1x128xf32, #tpu.memory_space<vmem>>, vector<1x128xf32>
    %9 = vector.broadcast %8 : vector<1x128xf32> to vector<16x128xf32>
    %10 = arith.addf %7, %9 : vector<16x128xf32>
    %cst_9 = arith.constant 0.000000e+00 : f32
    %11 = vector.broadcast %cst_9 : f32 to vector<16x128xf32>
    %12 = arith.cmpf ogt, %10, %11 : vector<16x128xf32>
    %cst_10 = arith.constant 0.00999999977 : f32
    %13 = vector.broadcast %cst_10 : f32 to vector<16x128xf32>
    %14 = arith.mulf %13, %10 : vector<16x128xf32>
    %15 = arith.select %12, %10, %14 : vector<16x128xi1>, vector<16x128xf32>
    %c0_11 = arith.constant 0 : index
    %c0_12 = arith.constant 0 : index
    %16 = vector.load %arg6[%c0_11, %c0_12] : memref<16x128xf32, #tpu.memory_space<vmem>>, vector<16x128xf32>
    tpu.vector_store %arg6[%c0_11, %c0_12], %15 {strides = array<i32>} : memref<16x128xf32, #tpu.memory_space<vmem>>, vector<16x128xf32>,
    %c0_13 = arith.constant 0 : index
    %c0_14 = arith.constant 0 : index
    %17 = vector.load %arg5[%c0_13, %c0_14] : memref<16x128xf32, #tpu.memory_space<vmem>>, vector<16x128xf32>
    tpu.vector_store %arg5[%c0_13, %c0_14], %15 {strides = array<i32>} : memref<16x128xf32, #tpu.memory_space<vmem>>, vector<16x128xf32>,
    return
  }
  func.func @transform_0(%arg0: i32) -> (i32, i32) {
    %c0_i32 = arith.constant 0 : i32
    %c0_i32_0 = arith.constant 0 : i32
    %c0_i32_1 = arith.constant 0 : i32
    return %c0_i32, %c0_i32_0 : i32, i32
  }
  func.func @transform_1(%arg0: i32) -> (i32, i32) {
    %c0_i32 = arith.constant 0 : i32
    %c0_i32_0 = arith.constant 0 : i32
    %c0_i32_1 = arith.constant 0 : i32
    return %c0_i32, %c0_i32_0 : i32, i32
  }
  func.func @transform_2(%arg0: i32) -> (i32, i32) {
    %c0_i32 = arith.constant 0 : i32
    %c0_i32_0 = arith.constant 0 : i32
    %c0_i32_1 = arith.constant 0 : i32
    return %c0_i32, %c0_i32_0 : i32, i32
  }
  func.func @transform_3(%arg0: i32) -> (i32, i32) {
    %c0_i32 = arith.constant 0 : i32
    %c0_i32_0 = arith.constant 0 : i32
    %c0_i32_1 = arith.constant 0 : i32
    return %c0_i32, %c0_i32_0 : i32, i32
  }
  func.func @transform_4(%arg0: i32) -> (i32, i32) {
    %c0_i32 = arith.constant 0 : i32
    %c0_i32_0 = arith.constant 0 : i32
    return %c0_i32, %arg0 : i32, i32
  }
}

</mosaic_0001>

<bundles_post_ra>
// kernel: tpu_custom_call.1
= control target key start
LH: loop header
LB: loop body
LE: loop exit
PB: predicated region body
PF: predicated region fallthrough
CT: control target
= control target key end

     0   :  { %9 = vsyncpa [#allocation4], 0  ;;  %s1123_s0 = inlined_call_operand.hbm [shape: f32[16,16], index: 0, kind: input, shape index: {}]   ;;  %s1124_s1 = inlined_call_operand.hbm [shape: f32[16,128], index: 1, kind: input, shape index: {}]   ;;  %s1125_s2 = inlined_call_operand.hbm [shape: f32[128,128], index: 2, kind: input, shape index: {}]   ;;  %s1126_s3 = inlined_call_operand.vmem [shape: f32[1,128], index: 3, kind: input, shape index: {}]   ;;  %s1127_s4 = inlined_call_operand.hbm [shape: f32[16,384], index: 4, kind: output, shape index: {}]  }
   0x1   :  { %10 = vsyncpa [#allocation7], 0 }
   0x2   :  { %11 = vsyncpa [#allocation5], 0 }
   0x3   :  { %13 = vsyncpa [#allocation5 + $0x1], 0  ;;  %s899_s15 = smov 0   ;;  %s901_s16 = smov 0  }
   0x4   :  { %s903_s17 = smov 0   ;;  %s905_s18 = smov 0  }
   0x5 LB: > { %s920_s19 = sadd.s32 4294967295, %s863_s18   ;;  %s516_s20 = sadd.s32 4294967294, %s863_s18   ;;  %s863_s18 = sphi %s905_s18, %s1147_s18   ;;  %s859_s17 = sphi %s903_s17, %s1146_s17   ;;  %s855_s16 = sphi %s901_s16, %s1145_s16   ;;  %s851_s15 = sphi %s899_s15, %s1144_s15  }
   0x6   : > { %s924_s21 = sadd.s32 1, %s863_s18   ;;  %s110_s22 = sadd.s32 1, %s859_s17 }
   0x7   : > { %s107_s23 = ssub.s32 %s863_s18, %s924_s21  ;;  %p120_p0 = scmp.ne.s32.totalorder %s859_s17, %s855_s16 }
   0x8   : > { %p108_p1 = scmp.eq.s32.totalorder %s107_s23, 0  ;;  %p121_p2 = scmp.eq.s32.totalorder %s920_s19, 2 }
   0x9   : > { %p126_p3 = scmp.ne.s32.totalorder %s855_s16, %s851_s15  ;;  %p127_p4 = scmp.eq.s32.totalorder %s516_s20, 2 }
   0xa   : > { %s935_s24 = scalar_select %p108_p1, %s859_s17, %s110_s22  }
   0xb   : > { %p937_p5 = por %p121_p2, %p120_p0  ;;  %p941_p6 = por %p127_p4, %p126_p3 }
   0xc   : > { %p517_p7 = scmp.ge.s32.totalorder %s863_s18, 1  ;;  %p134_p8 = scmp.lt.s32.totalorder %s863_s18, 4 }
   0xd   : > { %s1131_s25 = scalar_select %p937_p5, 1, 0 }
   0xe   : > { %s1132_s26 = scalar_select %p941_p6, 1, 0 }
   0xf   : > { %p1128_p10 = scmp.eq.s32.totalorder %s920_s19, 0  ;;  %p949_p11 = pnand %p517_p7, %p134_p8 }
  0x10   : > { %s865_s28 = smov [#allocation6]   ;;  %s866_s5 = smov [#allocation3]  }
  0x11   : > { %s1133_s27 = scalar_select %p949_p11, 1, 0 }
  0x12   : > { %p648_p12 = pneg %p949_p11  ;;  %s159_s29 = sshll.u32 %s865_s28, 4  ;;  %s955_s29 = int_to_ptr.vmem [resolvable:$true] %s159_s29 }
  0x13   : > { %s146_s6 = sshll.u32 %s866_s5, 4  ;;  %s867_s7 = smov [#allocation8]   ;;  %s963_s6 = int_to_ptr.vmem [resolvable:$true] %s146_s6 }
  0x14   : > { %p959_p13 = pnand %p1128_p10, %p648_p12  ;;  %s965_s8 = sshll.u32 %s867_s7, 4  ;;  %s173_s8 = int_to_ptr.vmem [resolvable:$true] %s965_s8 }
  0x15   : > { %s709_s11 = scalar_lea.hbm %s1124_s1, 256 }
  0x16   : > { %p710_p0 = scmp.ne.s32.totalorder %s1124_s1, %s709_s11  ;;  %p975_p1 = pneg %p959_p13 }
  0x17   : > { %p716_p4 = scmp.lt.u32.totalorder %s709_s11, %s1124_s1 }
  0x18   : > { %p712_p2 = pnand %p975_p1, %p710_p0 }
  0x1a   : > { %p713_p3 = pneg %p712_p2 }
  0x1c   : > { %p718_p7 = pnand %p716_p4, %p713_p3 }
  0x1e   : > { %721 = shalt.err (!%p718_p7)
}
  0x1f   : > { %s722_s23 = scalar_lea.vmem %s955_s29, 256  ;;  %p730_p10 = scmp.lt.s32.totalorder %s955_s29, %s955_s29 }
  0x20   : > { %p723_p8 = scmp.ne.s32.totalorder %s955_s29, %s722_s23  ;;  %p731_p6 = scmp.lt.s32.totalorder %s722_s23, %s722_s23 }
  0x22   : > { %p725_p12 = pnand %p723_p8, %p975_p1  ;;  %p732_p0 = por %p731_p6, %p730_p10 }
  0x24   : > { %p726_p9 = pneg %p725_p12 }
  0x26   : > { %p733_p2 = pnand %p732_p0, %p726_p9 }
  0x28   : > { %736 = shalt.err (!%p733_p2)
}
  0x29   : > { %s868_s28 = smov 128   ;;  %s869_s5 = smov 8  }
  0x2a   : > { %654 = dma.hbm_to_vmem [thread:$0]  (!%p959_p13), %s1124_s1, 256, %s955_s29, [#allocation7], %s868_s28, %s868_s28, %s869_s5  }
  0x2b   : > { %s737_s12 = scalar_lea.hbm %s1123_s0, 256 }
  0x2c   : > { %p738_p6 = scmp.ne.s32.totalorder %s1123_s0, %s737_s12  ;;  %p744_p3 = scmp.lt.u32.totalorder %s737_s12, %s1123_s0 }
  0x2e   : > { %p740_p9 = pnand %p738_p6, %p975_p1 }
  0x30   : > { %p741_p10 = pneg %p740_p9 }
  0x32   : > { %p746_p4 = pnand %p744_p3, %p741_p10 }
  0x34   : > { %749 = shalt.err (!%p746_p4)
}
  0x35   : > { %s750_s29 = scalar_lea.vmem %s963_s6, 256  ;;  %p758_p0 = scmp.lt.s32.totalorder %s963_s6, %s963_s6 }
  0x36   : > { %p751_p7 = scmp.ne.s32.totalorder %s963_s6, %s750_s29  ;;  %p759_p2 = scmp.lt.s32.totalorder %s750_s29, %s750_s29 }
  0x38   : > { %p753_p8 = pnand %p751_p7, %p975_p1  ;;  %p760_p6 = por %p759_p2, %p758_p0 }
  0x3a   : > { %p754_p12 = pneg %p753_p8 }
  0x3c   : > { %p761_p9 = pnand %p760_p6, %p754_p12 }
  0x3e   : > { %764 = shalt.err (!%p761_p9)
}
  0x3f   : > { %651 = dma.hbm_to_vmem [thread:$0]  (!%p959_p13), %s1123_s0, 256, %s963_s6, [#allocation4], %s868_s28, %s868_s28, %s869_s5  }
  0x40   : > { %s765_s12 = scalar_lea.hbm %s1125_s2, 2048 }
  0x41   : > { %p766_p10 = scmp.ne.s32.totalorder %s1125_s2, %s765_s12  ;;  %p772_p7 = scmp.lt.u32.totalorder %s765_s12, %s1125_s2 }
  0x43   : > { %p768_p3 = pnand %p766_p10, %p975_p1 }
  0x45   : > { %p769_p4 = pneg %p768_p3 }
  0x47   : > { %p774_p8 = pnand %p772_p7, %p769_p4 }
  0x49   : > { %777 = shalt.err (!%p774_p8)
}
  0x4a   : > { %s778_s29 = scalar_lea.vmem %s173_s8, 2048  ;;  %p786_p6 = scmp.lt.s32.totalorder %s173_s8, %s173_s8 }
  0x4b   : > { %p779_p12 = scmp.ne.s32.totalorder %s173_s8, %s778_s29  ;;  %p787_p9 = scmp.lt.s32.totalorder %s778_s29, %s778_s29 }
  0x4d   : > { %p781_p0 = pnand %p779_p12, %p975_p1  ;;  %p788_p5 = por %p787_p9, %p786_p6 }
  0x4f   : > { %p782_p2 = pneg %p781_p0 }
  0x51   : > { %p789_p11 = pnand %p788_p5, %p782_p2 }
  0x53   : > { %792 = shalt.err (!%p789_p11)
}
  0x54   : > { %657 = dma.hbm_to_vmem [thread:$0]  (!%p959_p13), %s1125_s2, 2048, %s173_s8, [#allocation7], %s868_s28, %s868_s28, %s869_s5  }
  0x55   : > { %p1136_p10 = scmp.ne.s32.totalorder %s1133_s27, 0 }
  0x56   : > { %p1137_p1 = scmp.eq.s32.totalorder (!%p1136_p10), %s920_s19, 0 }
  0x57   : > { %191 = sbr.rel (%p1136_p10) target bundleno = 562 (0x232), region = 36 }
  0x5e   : > { %838 = dma.done.wait (%p1137_p1), [#allocation4], 256   ;;  %p1138_p3 = pmov %p1137_p1 }
  0x5f   : > { %p1139_p5 = pmov %p1137_p1 }
  0x60   : > { %840 = vsyncadd (%p1138_p3), [#allocation4], 4294967040 }
  0x61   : > { %842 = dma.done.wait (%p1139_p5), [#allocation7], 2304   ;;  %p1140_p11 = pmov %p1137_p1 }
  0x62   : > { %s217_s30 = sand.u32 1, %s855_s16   ;;  %p1141_p13 = scmp.ne.s32.totalorder %s920_s19, 0 }
  0x63   : > { %844 = vsyncadd (%p1140_p11), [#allocation7], 4294964992  ;;  %s525_s8 = sshll.u32 %s217_s30, 4  ;;  %v224_v0 = vld [vmem:[#allocation6] sm:$0xff] (!%p1141_p13)  ;;  %v225_v1 = vld [vmem:[#allocation6 + $0x8] sm:$0xff] (!%p1141_p13) }
  0x64   : > { %s1060_s14 = scalar_lea.vmem [#allocation9], %s525_s8  ;;  %223 = sbr.rel (%p1141_p13) target bundleno = 107 (0x6b), region = 52  ;;  %226 = vst [vmem:[#allocation2] sm:$0xff] (!%p1141_p13), %v224_v0  ;;  %227 = vst [vmem:[#allocation2 + $0x8] sm:$0xff] (!%p1141_p13), %v225_v1 }
  0x6b PF: > { %v228_v2 = vld [vmem:[#allocation2] sm:$0xff]  ;;  %v229_v3 = vld [vmem:[#allocation2 + $0x8] sm:$0xff]  ;;  %v230_v4 = vld [vmem:[#allocation3] sm:$0xff]  ;;  %vm232_vm0 = vcmask 130048   ;;  %s531_s5 = sshll.u32 %s920_s19, 7  ;;  %s435_s9 = sshll.u32 %s1060_s14, 4  ;;  %s1076_s9 = int_to_ptr.vmem [resolvable:$true] %s435_s9 }
  0x6c   : > { %v598_v5 = vpack.c.bf16 %v229_v3, %v228_v2  ;;  %560 = vmatprep.mubr.msk.f32.mxu0 %vm232_vm0, %v230_v4  ;;  %v314_v6 = vld [vmem:[#allocation8] sm:$0xff]  ;;  %v315_v7 = vld [vmem:[#allocation8 + $0x8] sm:$0xff]  ;;  %v316_v9 = vld [vmem:[#allocation8 + $0x10] sm:$0xff]  ;;  %s1074_s12 = scalar_lea.hbm %s1127_s4, %s531_s5  ;;  %s1082_s19 = scalar_lea.sflag [#allocation5], %s217_s30 }
  0x6d   : > { %v602_v8 = vpack.c.bf16 %v315_v7, %v314_v6  ;;  %v317_v10 = vld [vmem:[#allocation8 + $0x18] sm:$0xff]  ;;  %v318_v12 = vld [vmem:[#allocation8 + $0x20] sm:$0xff]  ;;  %v319_v13 = vld [vmem:[#allocation8 + $0x28] sm:$0xff]  ;;  %s793_s13 = scalar_lea.vmem %s1076_s9, 256  ;;  %p1142_p7 = scmp.ne.s32.totalorder %s1131_s25, 0 }
  0x6e   : > { %599 = vmatprep.subr.bf16.mxu0 %v598_v5  ;;  %v606_v11 = vpack.c.bf16 %v317_v10, %v316_v9  ;;  %v231_v14 = vld [vmem:[#allocation3 + $0x8] sm:$0xff]  ;;  %v610_v15 = vpack.c.bf16 %v319_v13, %v318_v12  ;;  %v320_v16 = vld [vmem:[#allocation8 + $0x30] sm:$0xff]  ;;  %v321_v17 = vld [vmem:[#allocation8 + $0x38] sm:$0xff]  ;;  %p794_p4 = scmp.ne.s32.totalorder %s1076_s9, %s793_s13  ;;  %s870_s20 = smov [#allocation9]  }
  0x6f   : > { %601 = vmatpush3.bf16.msra.mxu0 %v598_v5  ;;  %603 = vmatprep.subr.bf16.mxu1 %v602_v8  ;;  %v614_v18 = vpack.c.bf16 %v321_v17, %v320_v16  ;;  %v322_v19 = vld [vmem:[#allocation8 + $0x40] sm:$0xff]  ;;  %v323_v20 = vld [vmem:[#allocation8 + $0x48] sm:$0xff]  ;;  %v324_v22 = vld [vmem:[#allocation8 + $0x50] sm:$0xff]  ;;  %s797_s22 = sshll.u32 %s870_s20, 4  ;;  %s798_s22 = int_to_ptr.vmem [resolvable:$false] %s797_s22 }
  0x70   : > { %605 = vmatpush3.bf16.msra.mxu1 %v602_v8  ;;  %v618_v21 = vpack.c.bf16 %v323_v20, %v322_v19  ;;  %v325_v23 = vld [vmem:[#allocation8 + $0x58] sm:$0xff]  ;;  %v326_v25 = vld [vmem:[#allocation8 + $0x60] sm:$0xff]  ;;  %v327_v26 = vld [vmem:[#allocation8 + $0x68] sm:$0xff]  ;;  %p795_p8 = pnand %p794_p4, %p1142_p7  ;;  %s799_s23 = scalar_lea.vmem %s798_s22, 512 }
  0x71   : > { %607 = vmatprep.subr.bf16.mxu1 %v606_v11  ;;  %v622_v24 = vpack.c.bf16 %v325_v23, %v324_v22  ;;  %v626_v27 = vpack.c.bf16 %v327_v26, %v326_v25  ;;  %v328_v28 = vld [vmem:[#allocation8 + $0x70] sm:$0xff]  ;;  %v329_v29 = vld [vmem:[#allocation8 + $0x78] sm:$0xff]  ;;  %p800_p0 = scmp.lt.s32.totalorder %s1076_s9, %s798_s22  ;;  %p801_p2 = scmp.lt.s32.totalorder %s799_s23, %s793_s13 }
  0x72   : > { %561 = vmatmul.mubr.msk.f32.vlgmr.msra.gmra.mrb[0].mxu0 %vm232_vm0, %v231_v14  ;;  %v630_v30 = vpack.c.bf16 %v329_v29, %v328_v28  ;;  %v529_v33 = vld [vmem:[%s1126_s3] ss:$0 sm:$0xff]  ;;  %p796_p12 = pneg %p795_p8 }
  0x73   : > { %p802_p6 = por %p801_p2, %p800_p0 }
  0x74   : > { %609 = vmatpush3.bf16.msra.mxu1 %v606_v11 }
  0x75   : > { %611 = vmatprep.subr.bf16.mxu1 %v610_v15  ;;  %p803_p9 = pnand %p802_p6, %p796_p12 }
  0x78   : > { %613 = vmatpush3.bf16.msra.mxu1 %v610_v15 }
  0x79   : > { %615 = vmatprep.subr.bf16.mxu1 %v614_v18 }
  0x7c   : > { %617 = vmatpush3.bf16.msra.mxu1 %v614_v18 }
  0x7d   : > { %619 = vmatprep.subr.bf16.mxu1 %v618_v21 }
  0x80   : > { %621 = vmatpush3.bf16.msra.mxu1 %v618_v21 }
  0x81   : > { %623 = vmatprep.subr.bf16.mxu1 %v622_v24 }
  0x84   : > { %625 = vmatpush3.bf16.msra.mxu1 %v622_v24 }
  0x85   : > { %627 = vmatprep.subr.bf16.mxu1 %v626_v27 }
  0x88   : > { %629 = vmatpush3.bf16.msra.mxu1 %v626_v27 }
  0x89   : > { %631 = vmatprep.subr.bf16.mxu1 %v630_v30 }
  0x8c   : > { %633 = vmatpush3.bf16.msra.mxu1 %v630_v30 }
 0x145   : > { %v562_v31 = vpop.f32.mrb[0].mxu0 }
 0x146   : > { %v305_v32 = vpop.f32.mrb[1].mxu0 }
 0x147   : > { %595 = vmatprep.mubr.f32.mxu1 %v305_v32 }
 0x148   : > { %596 = vmatmul.mubr.f32.vlgmr.msra.gmra.mrb[0].mxu1 %v562_v31 }
 0x21b   : > { %v597_v34 = vpop.f32.mrb[0].mxu1 }
 0x21c   : > { %v409_v35 = vadd.f32 %v597_v34, %v529_v33  ;;  %v403_v36 = vpop.f32.mrb[1].mxu1 }
 0x21d   : > { %v404_v37 = vadd.f32 %v529_v33, %v403_v36 }
 0x21e   : > { %vm413_vm1 = vcmp.gt.f32.partialorder %v409_v35, 0.0  ;;  %v415_v38 = vmul.f32 0.01, %v409_v35 }
 0x21f   : > { %vm412_vm2 = vcmp.gt.f32.partialorder %v404_v37, 0.0  ;;  %v414_v39 = vmul.f32 0.01, %v404_v37 }
 0x220   : > { %v417_v40 = vsel %vm413_vm1, %v409_v35, %v415_v38 }
 0x221   : > { %419 = vst [vmem:[#allocation2 + $0x8] sm:$0xff] %v417_v40  ;;  %421 = vst [vmem:[%s1060_s14 + $0x8] sm:$0xff] %v417_v40  ;;  %v416_v41 = vsel %vm412_vm2, %v404_v37, %v414_v39 }
 0x222   : > { %418 = vst [vmem:[#allocation2] sm:$0xff] %v416_v41  ;;  %420 = vst [vmem:[%s1060_s14] sm:$0xff] %v416_v41 }
 0x223   : > { %806 = shalt.err (!%p803_p9)
}
 0x224   : > { %s807_s29 = scalar_lea.hbm %s1074_s12, 256  ;;  %s811_s30 = scalar_lea.hbm %s1127_s4, 768 }
 0x225   : > { %p808_p10 = scmp.ne.s32.totalorder %s1074_s12, %s807_s29  ;;  %p812_p5 = scmp.lt.u32.totalorder %s1074_s12, %s1127_s4 }
 0x226   : > { %p813_p11 = scmp.lt.u32.totalorder %s811_s30, %s807_s29  ;;  %p815_p4 = scmp.lt.u32.totalorder %s807_s29, %s1074_s12 }
 0x227   : > { %p809_p1 = pnand %p808_p10, %p1142_p7 }
 0x228   : > { %p814_p13 = por %p813_p11, %p812_p5 }
 0x229   : > { %p810_p3 = pneg %p809_p1 }
 0x22a   : > { %p816_p8 = por %p815_p4, %p814_p13 }
 0x22c   : > { %p817_p12 = pnand %p816_p8, %p810_p3 }
 0x22e   : > { %820 = shalt.err (!%p817_p12)
}
 0x22f   : > { %s871_s27 = smov 128   ;;  %s872_s28 = smov 384  }
 0x230   : > { %s873_s5 = smov 8  }
 0x231   : > { %646 = dma.vmem_to_hbm [thread:$0]  (%p1142_p7), %s1076_s9, 256, %s1074_s12, %s1082_s19, %s871_s27, %s872_s28, %s873_s5  }
 0x232 PF: > { %p668_p0 = scmp.ge.s32.totalorder %s863_s18, 2  ;;  %s450_s10 = sand.u32 1, %s851_s15  }
 0x233   : > { %p1143_p2 = scmp.ne.s32.totalorder %s1132_s26, 0  ;;  %s451_s11 = scalar_lea.sflag [#allocation5], %s450_s10 }
 0x235   : > { %p659_p6 = pnand %p668_p0, %p1143_p2 }
 0x237   : > { %846 = dma.done.wait (!%p659_p6), %s451_s11, 256  }
 0x238   : > { %848 = vsyncadd (!%p659_p6), %s451_s11, 4294967040  ;;  %p16_p9 = scmp.ge.s32.totalorder %s924_s21, 5   ;;  %s1144_s15 = smov %s855_s16 }
 0x239   : > { %s1145_s16 = smov %s859_s17  ;;  %s1146_s17 = smov %s935_s24 }
 0x23a   : > { %s1147_s18 = smov %s924_s21  ;;  %18 = sbr.rel (!%p16_p9) target bundleno = 5 (0x5), region = 85 }
 0x241   :  { %456 = vsyncpa [#allocation4], 1 }
 0x242   :  { %458 = vsyncpa [#allocation4 + $0x1], 1 }
 0x243   :  { %459 = vsyncpa [#allocation7], 1 }
 0x244   :  { %460 = vsyncpa [#allocation5], 1 }
 0x245   :  { %462 = vsyncpa [#allocation5 + $0x1], 1 }

</bundles_post_ra>
